<compile_context>
chip_gen: v7x
topology: tpu7x:2x2x1
jax: 0.10.0
libtpu: 0.0.40
codegen_flags: <defaults>
</compile_context>

<pallas_src>
import math

import jax
import jax.numpy as jnp
from jax.experimental import pallas as pl
from jax.experimental.pallas import tpu as pltpu

LANE = 128
SUBLANE = 8


def _round_up(x, m):
    return (x + m - 1) // m * m


# --------------------------- activations (in-kernel) -------------------------
def _apply_act(y, act, real_width):
    """Activation on an f32 value.  Uses only Mosaic-friendly primitives.

    `real_width` is the un-padded feature width; only softmax needs it (padded
    lanes are masked out of the normalization)."""
    if act in ('relu', 'relu_not_inplace'):
        return jnp.maximum(y, 0.0)
    if act == 'sigmoid':
        return 1.0 / (1.0 + jnp.exp(-y))
    if act == 'tanh':
        return jnp.tanh(y)
    if act == 'softplus':
        # numerically stable softplus using only exp/log
        return jnp.maximum(y, 0.0) + jnp.log(1.0 + jnp.exp(-jnp.abs(y)))
    if act == 'leakyrelu':
        return jnp.where(y >= 0.0, y, 0.2 * y)        # module hard-codes slope 0.2
    if act == 'gelu':
        return jax.nn.gelu(y, approximate=False)      # torch.nn.GELU default = exact erf
    if act == 'elu':
        return jnp.where(y > 0.0, y, jnp.exp(y) - 1.0)
    if act == 'selu':
        alpha, scale = 1.6732632423543772, 1.0507009873554805
        return scale * jnp.where(y > 0.0, y, alpha * (jnp.exp(y) - 1.0))
    if act == 'softmax':
        pad_width = y.shape[-1]
        if real_width != pad_width:
            col = jax.lax.broadcasted_iota(jnp.int32, y.shape, y.ndim - 1)
            y = jnp.where(col < real_width, y, -1e30)  # padded lanes -> ~0 prob
        return jax.nn.softmax(y, axis=-1)
    if act == 'linear' or act is None:
        return y
    raise ValueError(f'Unexpected activation: {act}')


# ------------------------------ fused MLP kernel ------------------------------
def _make_mlp_kernel(acts, real_widths):
    """Whole-MLP kernel: refs = (t, z, q, Wt, Wz, Wq, b0, W1, b1, ..., out)."""
    n_layers = len(real_widths)

    def _contrib(x, w):
        # width-1 inputs (t, q): broadcast-multiply on the VPU instead of a
        # degenerate K=1 MXU matmul.
        if x.shape[-1] == 1:
            return x * w[...]
        return jnp.dot(x, w[...], preferred_element_type=jnp.float32,
                       precision=jax.lax.Precision.HIGHEST)

    def kernel(*refs):
        t_ref, z_ref, q_ref = refs[:3]
        o_ref = refs[-1]
        p = refs[3:-1]

        # ---- layer 0: concat folded into split weights ----
        wt, wz, wq, b0 = p[0], p[1], p[2], p[3]
        y = _contrib(z_ref[...].astype(jnp.float32), wz)
        y = y + _contrib(t_ref[...].astype(jnp.float32), wt)
        y = y + _contrib(q_ref[...].astype(jnp.float32), wq)
        y = y + b0[...]
        y = _apply_act(y, acts[0], real_widths[0])

        # ---- remaining layers: activations stay in VMEM/vregs ----
        idx = 4
        for li in range(1, n_layers):
            w, b = p[idx], p[idx + 1]
            idx += 2
            y = jnp.dot(y, w[...], preferred_element_type=jnp.float32,
                        precision=jax.lax.Precision.HIGHEST) + b[...]
            y = _apply_act(y, acts[li], real_widths[li])

        o_ref[...] = y.astype(o_ref.dtype)   # lane-dense (TM, OUT_PAD) store

    return kernel


# --------------------------- params: init & packing ---------------------------
def init_vf_fc_vec(key, in_chan, out_chan, l_hidden):
    """nn.Linear-style init U(-1/sqrt(fan_in), 1/sqrt(fan_in)); weights stored
    pre-transposed as [in, out]."""
    widths = list(l_hidden) + [out_chan]
    params = []
    prev = in_chan
    for n in widths:
        key, kw, kb = jax.random.split(key, 3)
        bound = 1.0 / math.sqrt(prev)
        w = jax.random.uniform(kw, (prev, n), jnp.float32, -bound, bound)
        b = jax.random.uniform(kb, (n,), jnp.float32, -bound, bound)
        params.append((w, b))
        prev = n
    return params


def pack_vf_fc_vec(params, t_dim, z_dim, q_dim):
    """One-time packing for the kernel:
      * split layer-0 weight along the [t | z | q] concat rows,
      * zero-pad every feature dim up to a 128-lane multiple (lane-dense).
    Zero padding is an exact no-op for the math (next layer's padded weight
    rows are zero; softmax masks padded lanes in-kernel)."""
    real_widths = [w.shape[1] for (w, _) in params]
    pad_widths = [_round_up(n, LANE) for n in real_widths]

    def pad_cols(a, width):
        return jnp.pad(a, ((0, 0), (0, width - a.shape[1])))

    w0, b0 = params[0]
    assert w0.shape[0] == t_dim + z_dim + q_dim
    h0p = pad_widths[0]
    operands = [
        pad_cols(w0[:t_dim], h0p),                    # Wt
        pad_cols(w0[t_dim:t_dim + z_dim], h0p),       # Wz
        pad_cols(w0[t_dim + z_dim:], h0p),            # Wq
        pad_cols(b0.reshape(1, -1), h0p),             # b0
    ]
    prev_pad = h0p
    for (w, b), pw in zip(params[1:], pad_widths[1:]):
        wp = jnp.pad(w, ((0, prev_pad - w.shape[0]), (0, pw - w.shape[1])))
        bp = pad_cols(b.reshape(1, -1), pw)
        operands += [wp, bp]
        prev_pad = pw

    return {
        'operands': operands,
        'real_widths': real_widths,
        'pad_widths': pad_widths,
        't_dim': t_dim, 'z_dim': z_dim, 'q_dim': q_dim,
    }


# ---------------------------------- forward -----------------------------------
def vf_fc_vec_forward(packed, acts, t, z, q, *, block_m=512):
    """y = MLP(concat([t, z, q], dim=1)) as one fused pallas_call."""
    B = t.shape[0]
    t_dim, z_dim, q_dim = packed['t_dim'], packed['z_dim'], packed['q_dim']
    assert t.shape[1] == t_dim and z.shape[1] == z_dim and q.shape[1] == q_dim
    real_widths = packed['real_widths']
    out_chan = real_widths[-1]
    out_pad = packed['pad_widths'][-1]
    operands = packed['operands']

    # Batch tiling: TM rows per grid step (multiple of 8 sublanes).  The grid
    # axis is "parallel" so it shards across v7x's two TensorCores; per-tile
    # VMEM (x + out + all weights) is tiny, well under the 32 MiB scoped limit.
    tm = min(block_m, _round_up(B, SUBLANE))
    b_pad = _round_up(B, tm)
    if b_pad != B:
        rpad = ((0, b_pad - B), (0, 0))
        t = jnp.pad(t, rpad)
        z = jnp.pad(z, rpad)
        q = jnp.pad(q, rpad)

    def batch_spec(d):
        return pl.BlockSpec((tm, d), lambda i: (i, 0))

    def full_spec(a):
        shp = a.shape
        return pl.BlockSpec(shp, lambda i, _s=shp: (0,) * len(_s))

    out_padded = pl.pallas_call(
        _make_mlp_kernel(tuple(acts), tuple(real_widths)),
        out_shape=jax.ShapeDtypeStruct((b_pad, out_pad), t.dtype),
        grid=(b_pad // tm,),
        in_specs=[batch_spec(t_dim), batch_spec(z_dim), batch_spec(q_dim)]
                 + [full_spec(op) for op in operands],
        out_specs=pl.BlockSpec((tm, out_pad), lambda i: (i, 0)),
        compiler_params=pltpu.CompilerParams(
            dimension_semantics=("parallel",)),
    )(t, z, q, *operands)

    # drop lane / batch padding (tiny slice, only real columns written back)
    return out_padded[:B, :out_chan]


# ------------------------------------ main -------------------------------------
if __name__ == "__main__":
    # small synthetic config: in_chan = 1 (t) + 32 (z) + 1 (q) = 34
    batch = 8
    z_dim = 32
    in_chan = 1 + z_dim + 1
    out_chan = 1
    l_hidden = [64, 32]
    activation = ['relu', 'tanh']
    out_activation = 'sigmoid'
    acts = activation + [out_activation]

    key = jax.random.PRNGKey(0)
    kp, kt, kz, kq = jax.random.split(key, 4)

    params = init_vf_fc_vec(kp, in_chan, out_chan, l_hidden)
    packed = pack_vf_fc_vec(params, t_dim=1, z_dim=z_dim, q_dim=1)

    t = jax.random.normal(kt, (batch, 1), jnp.float32)
    z = jax.random.normal(kz, (batch, z_dim), jnp.float32)
    q = jax.random.normal(kq, (batch, 1), jnp.float32)

    out = vf_fc_vec_forward(packed, acts, t, z, q)
    out = jax.block_until_ready(out)
    assert out.shape == (batch, out_chan)

    # reference: plain-JAX forward with the true (unpadded) weights
    x_ref = jnp.concatenate([t, z, q], axis=1)
    for (w, b), act in zip(params, acts):
        x_ref = jnp.dot(x_ref, w, precision=jax.lax.Precision.HIGHEST) + b.reshape(1, -1)
        x_ref = _apply_act(x_ref, act, x_ref.shape[-1])

    max_err = float(jnp.max(jnp.abs(out - x_ref)))
    assert jnp.allclose(out, x_ref, atol=2e-5, rtol=2e-5), max_err

    print("KERNEL_OK")
</pallas_src>

<mosaic_0001>
module attributes {stable_mosaic.version = 11 : i64} {
  func.func @kernel(%arg0: i32, %arg1: memref<8x1xf32, #tpu.memory_space<vmem>>, %arg2: memref<8x32xf32, #tpu.memory_space<vmem>>, %arg3: memref<8x1xf32, #tpu.memory_space<vmem>>, %arg4: memref<1x128xf32, #tpu.memory_space<vmem>>, %arg5: memref<32x128xf32, #tpu.memory_space<vmem>>, %arg6: memref<1x128xf32, #tpu.memory_space<vmem>>, %arg7: memref<1x128xf32, #tpu.memory_space<vmem>>, %arg8: memref<128x128xf32, #tpu.memory_space<vmem>>, %arg9: memref<1x128xf32, #tpu.memory_space<vmem>>, %arg10: memref<128x128xf32, #tpu.memory_space<vmem>>, %arg11: memref<1x128xf32, #tpu.memory_space<vmem>>, %arg12: memref<8x128xf32, #tpu.memory_space<vmem>>) attributes {dimension_semantics = [#tpu.dimension_semantics<parallel>], iteration_bounds = array<i64: 1>, scalar_prefetch = 0 : i64, scratch_operands = 0 : i64, tpu.core_type = #tpu.core_type<tc>, window_params = [{transform_indices = @transform_0, window_bounds = array<i64: 8, 1>}, {transform_indices = @transform_1, window_bounds = array<i64: 8, 32>}, {transform_indices = @transform_2, window_bounds = array<i64: 8, 1>}, {pipeline_mode = #tpu.pipeline_mode<synchronous>, transform_indices = @transform_3, window_bounds = array<i64: 1, 128>}, {pipeline_mode = #tpu.pipeline_mode<synchronous>, transform_indices = @transform_4, window_bounds = array<i64: 32, 128>}, {pipeline_mode = #tpu.pipeline_mode<synchronous>, transform_indices = @transform_5, window_bounds = array<i64: 1, 128>}, {pipeline_mode = #tpu.pipeline_mode<synchronous>, transform_indices = @transform_6, window_bounds = array<i64: 1, 128>}, {pipeline_mode = #tpu.pipeline_mode<synchronous>, transform_indices = @transform_7, window_bounds = array<i64: 128, 128>}, {pipeline_mode = #tpu.pipeline_mode<synchronous>, transform_indices = @transform_8, window_bounds = array<i64: 1, 128>}, {pipeline_mode = #tpu.pipeline_mode<synchronous>, transform_indices = @transform_9, window_bounds = array<i64: 128, 128>}, {pipeline_mode = #tpu.pipeline_mode<synchronous>, transform_indices = @transform_10, window_bounds = array<i64: 1, 128>}, {transform_indices = @transform_11, window_bounds = array<i64: 8, 128>}]} {
    %c0 = arith.constant 0 : index
    %c0_0 = arith.constant 0 : index
    %0 = vector.load %arg2[%c0, %c0_0] : memref<8x32xf32, #tpu.memory_space<vmem>>, vector<8x32xf32>
    %c0_1 = arith.constant 0 : index
    %c0_2 = arith.constant 0 : index
    %1 = vector.load %arg5[%c0_1, %c0_2] : memref<32x128xf32, #tpu.memory_space<vmem>>, vector<32x128xf32>
    %cst = arith.constant dense<0.000000e+00> : vector<8x128xf32>
    %2 = tpu.matmul %0, %1, %cst {dimension_numbers = #tpu.dot_dimension_numbers<[1], [0], [0], [1], [0, 0, 1, 1], [], []>, precision = #tpu.contract_precision<fp32>} : vector<8x32xf32>, vector<32x128xf32>, vector<8x128xf32> -> vector<8x128xf32>
    %c0_3 = arith.constant 0 : index
    %c0_4 = arith.constant 0 : index
    %3 = vector.load %arg1[%c0_3, %c0_4] : memref<8x1xf32, #tpu.memory_space<vmem>>, vector<8x1xf32>
    %c0_5 = arith.constant 0 : index
    %c0_6 = arith.constant 0 : index
    %4 = vector.load %arg4[%c0_5, %c0_6] : memref<1x128xf32, #tpu.memory_space<vmem>>, vector<1x128xf32>
    %5 = vector.broadcast %3 : vector<8x1xf32> to vector<8x128xf32>
    %6 = vector.broadcast %4 : vector<1x128xf32> to vector<8x128xf32>
    %7 = arith.mulf %5, %6 : vector<8x128xf32>
    %8 = arith.addf %2, %7 : vector<8x128xf32>
    %c0_7 = arith.constant 0 : index
    %c0_8 = arith.constant 0 : index
    %9 = vector.load %arg3[%c0_7, %c0_8] : memref<8x1xf32, #tpu.memory_space<vmem>>, vector<8x1xf32>
    %c0_9 = arith.constant 0 : index
    %c0_10 = arith.constant 0 : index
    %10 = vector.load %arg6[%c0_9, %c0_10] : memref<1x128xf32, #tpu.memory_space<vmem>>, vector<1x128xf32>
    %11 = vector.broadcast %9 : vector<8x1xf32> to vector<8x128xf32>
    %12 = vector.broadcast %10 : vector<1x128xf32> to vector<8x128xf32>
    %13 = arith.mulf %11, %12 : vector<8x128xf32>
    %14 = arith.addf %8, %13 : vector<8x128xf32>
    %c0_11 = arith.constant 0 : index
    %c0_12 = arith.constant 0 : index
    %15 = vector.load %arg7[%c0_11, %c0_12] : memref<1x128xf32, #tpu.memory_space<vmem>>, vector<1x128xf32>
    %16 = vector.broadcast %15 : vector<1x128xf32> to vector<8x128xf32>
    %17 = arith.addf %14, %16 : vector<8x128xf32>
    %cst_13 = arith.constant 0.000000e+00 : f32
    %18 = vector.broadcast %cst_13 : f32 to vector<8x128xf32>
    %19 = arith.maximumf %17, %18 : vector<8x128xf32>
    %c0_14 = arith.constant 0 : index
    %c0_15 = arith.constant 0 : index
    %20 = vector.load %arg8[%c0_14, %c0_15] : memref<128x128xf32, #tpu.memory_space<vmem>>, vector<128x128xf32>
    %cst_16 = arith.constant dense<0.000000e+00> : vector<8x128xf32>
    %21 = tpu.matmul %19, %20, %cst_16 {dimension_numbers = #tpu.dot_dimension_numbers<[1], [0], [0], [1], [0, 0, 1, 1], [], []>, precision = #tpu.contract_precision<fp32>} : vector<8x128xf32>, vector<128x128xf32>, vector<8x128xf32> -> vector<8x128xf32>
    %c0_17 = arith.constant 0 : index
    %c0_18 = arith.constant 0 : index
    %22 = vector.load %arg9[%c0_17, %c0_18] : memref<1x128xf32, #tpu.memory_space<vmem>>, vector<1x128xf32>
    %23 = vector.broadcast %22 : vector<1x128xf32> to vector<8x128xf32>
    %24 = arith.addf %21, %23 : vector<8x128xf32>
    %25 = math.tanh %24 : vector<8x128xf32>
    %c0_19 = arith.constant 0 : index
    %c0_20 = arith.constant 0 : index
    %26 = vector.load %arg10[%c0_19, %c0_20] : memref<128x128xf32, #tpu.memory_space<vmem>>, vector<128x128xf32>
    %cst_21 = arith.constant dense<0.000000e+00> : vector<8x128xf32>
    %27 = tpu.matmul %25, %26, %cst_21 {dimension_numbers = #tpu.dot_dimension_numbers<[1], [0], [0], [1], [0, 0, 1, 1], [], []>, precision = #tpu.contract_precision<fp32>} : vector<8x128xf32>, vector<128x128xf32>, vector<8x128xf32> -> vector<8x128xf32>
    %c0_22 = arith.constant 0 : index
    %c0_23 = arith.constant 0 : index
    %28 = vector.load %arg11[%c0_22, %c0_23] : memref<1x128xf32, #tpu.memory_space<vmem>>, vector<1x128xf32>
    %29 = vector.broadcast %28 : vector<1x128xf32> to vector<8x128xf32>
    %30 = arith.addf %27, %29 : vector<8x128xf32>
    %cst_24 = arith.constant 0.000000e+00 : f32
    %31 = vector.broadcast %cst_24 : f32 to vector<8x128xf32>
    %32 = arith.subf %31, %30 : vector<8x128xf32>
    %33 = math.exp %32 : vector<8x128xf32>
    %cst_25 = arith.constant 1.000000e+00 : f32
    %34 = vector.broadcast %cst_25 : f32 to vector<8x128xf32>
    %35 = arith.addf %34, %33 : vector<8x128xf32>
    %cst_26 = arith.constant 1.000000e+00 : f32
    %36 = vector.broadcast %cst_26 : f32 to vector<8x128xf32>
    %37 = arith.divf %36, %35 : vector<8x128xf32>
    %c0_27 = arith.constant 0 : index
    %c0_28 = arith.constant 0 : index
    %38 = vector.load %arg12[%c0_27, %c0_28] : memref<8x128xf32, #tpu.memory_space<vmem>>, vector<8x128xf32>
    tpu.vector_store %arg12[%c0_27, %c0_28], %37 {strides = array<i32>} : memref<8x128xf32, #tpu.memory_space<vmem>>, vector<8x128xf32>,
    return
  }
  func.func @transform_0(%arg0: i32) -> (i32, i32) {
    %c0_i32 = arith.constant 0 : i32
    %c0_i32_0 = arith.constant 0 : i32
    return %arg0, %c0_i32 : i32, i32
  }
  func.func @transform_1(%arg0: i32) -> (i32, i32) {
    %c0_i32 = arith.constant 0 : i32
    %c0_i32_0 = arith.constant 0 : i32
    return %arg0, %c0_i32 : i32, i32
  }
  func.func @transform_2(%arg0: i32) -> (i32, i32) {
    %c0_i32 = arith.constant 0 : i32
    %c0_i32_0 = arith.constant 0 : i32
    return %arg0, %c0_i32 : i32, i32
  }
  func.func @transform_3(%arg0: i32) -> (i32, i32) {
    %c0_i32 = arith.constant 0 : i32
    %c0_i32_0 = arith.constant 0 : i32
    %c0_i32_1 = arith.constant 0 : i32
    return %c0_i32, %c0_i32_0 : i32, i32
  }
  func.func @transform_4(%arg0: i32) -> (i32, i32) {
    %c0_i32 = arith.constant 0 : i32
    %c0_i32_0 = arith.constant 0 : i32
    %c0_i32_1 = arith.constant 0 : i32
    return %c0_i32, %c0_i32_0 : i32, i32
  }
  func.func @transform_5(%arg0: i32) -> (i32, i32) {
    %c0_i32 = arith.constant 0 : i32
    %c0_i32_0 = arith.constant 0 : i32
    %c0_i32_1 = arith.constant 0 : i32
    return %c0_i32, %c0_i32_0 : i32, i32
  }
  func.func @transform_6(%arg0: i32) -> (i32, i32) {
    %c0_i32 = arith.constant 0 : i32
    %c0_i32_0 = arith.constant 0 : i32
    %c0_i32_1 = arith.constant 0 : i32
    return %c0_i32, %c0_i32_0 : i32, i32
  }
  func.func @transform_7(%arg0: i32) -> (i32, i32) {
    %c0_i32 = arith.constant 0 : i32
    %c0_i32_0 = arith.constant 0 : i32
    %c0_i32_1 = arith.constant 0 : i32
    return %c0_i32, %c0_i32_0 : i32, i32
  }
  func.func @transform_8(%arg0: i32) -> (i32, i32) {
    %c0_i32 = arith.constant 0 : i32
    %c0_i32_0 = arith.constant 0 : i32
    %c0_i32_1 = arith.constant 0 : i32
    return %c0_i32, %c0_i32_0 : i32, i32
  }
  func.func @transform_9(%arg0: i32) -> (i32, i32) {
    %c0_i32 = arith.constant 0 : i32
    %c0_i32_0 = arith.constant 0 : i32
    %c0_i32_1 = arith.constant 0 : i32
    return %c0_i32, %c0_i32_0 : i32, i32
  }
  func.func @transform_10(%arg0: i32) -> (i32, i32) {
    %c0_i32 = arith.constant 0 : i32
    %c0_i32_0 = arith.constant 0 : i32
    %c0_i32_1 = arith.constant 0 : i32
    return %c0_i32, %c0_i32_0 : i32, i32
  }
  func.func @transform_11(%arg0: i32) -> (i32, i32) {
    %c0_i32 = arith.constant 0 : i32
    %c0_i32_0 = arith.constant 0 : i32
    return %arg0, %c0_i32 : i32, i32
  }
}

</mosaic_0001>

<bundles_post_ra>
// kernel: tpu_custom_call.1
= control target key start
LH: loop header
LB: loop body
LE: loop exit
PB: predicated region body
PF: predicated region fallthrough
CT: control target
= control target key end

     0   :  { %16 = vsyncpa [#allocation3], 0  ;;  %s3879_s0 = inlined_call_operand.vmem [shape: f32[8,1], index: 0, kind: input, shape index: {}]   ;;  %s3880_s1 = inlined_call_operand.hbm [shape: f32[8,32], index: 1, kind: input, shape index: {}]   ;;  %s3881_s2 = inlined_call_operand.vmem [shape: f32[8,1], index: 2, kind: input, shape index: {}]   ;;  %s3882_s3 = inlined_call_operand.vmem [shape: f32[1,128], index: 3, kind: input, shape index: {}]   ;;  %s3883_s4 = inlined_call_operand.vmem [shape: f32[32,128], index: 4, kind: input, shape index: {}]   ;;  %s3884_s5 = inlined_call_operand.vmem [shape: f32[1,128], index: 5, kind: input, shape index: {}]   ;;  %s3885_s6 = inlined_call_operand.vmem [shape: f32[1,128], index: 6, kind: input, shape index: {}]   ;;  %s3886_s7 = inlined_call_operand.hbm [shape: f32[128,128], index: 7, kind: input, shape index: {}]   ;;  %s3887_s8 = inlined_call_operand.vmem [shape: f32[1,128], index: 8, kind: input, shape index: {}]   ;;  %s3888_s9 = inlined_call_operand.hbm [shape: f32[128,128], index: 9, kind: input, shape index: {}]   ;;  %s3889_s10 = inlined_call_operand.vmem [shape: f32[1,128], index: 10, kind: input, shape index: {}]   ;;  %s3890_s11 = inlined_call_operand.hbm [shape: f32[8,128], index: 11, kind: output, shape index: {}]  }
   0x1   :  { %17 = vsyncpa [#allocation6], 0 }
   0x2   :  { %18 = vsyncpa [#allocation4], 0  ;;  %s3144_s17 = smov [#allocation5]   ;;  %s3050_s21 = scalar_lea.hbm %s3886_s7, 2048 }
   0x3   :  { %s46_s18 = sshll.u32 %s3144_s17, 4  ;;  %p3051_p0 = scmp.ne.s32.totalorder %s3886_s7, %s3050_s21  ;;  %s47_s18 = int_to_ptr.vmem [resolvable:$true] %s46_s18 }
   0x4   :  { %p3054_p1 = scmp.lt.u32.totalorder %s3050_s21, %s3886_s7 }
   0x6   :  { %p3056_p2 = pnand %p3054_p1, %p3051_p0 }
   0x8   :  { %3059 = shalt.err (!%p3056_p2)
}
   0x9   :  { %s3060_s26 = scalar_lea.vmem %s47_s18, 2048  ;;  %p3065_p4 = scmp.lt.s32.totalorder %s47_s18, %s47_s18 }
   0xa   :  { %p3061_p3 = scmp.ne.s32.totalorder %s47_s18, %s3060_s26  ;;  %p3066_p5 = scmp.lt.s32.totalorder %s3060_s26, %s3060_s26 }
   0xc   :  { %p3067_p6 = por %p3066_p5, %p3065_p4 }
   0xe   :  { %p3068_p7 = pnand %p3067_p6, %p3061_p3 }
  0x10   :  { %3071 = shalt.err (!%p3068_p7)
}
  0x11   :  { %s3145_s27 = smov 128   ;;  %s3146_s28 = smov 8  }
  0x12   :  { %52 = dma.hbm_to_vmem [thread:$0]  %s3886_s7, 2048, %s47_s18, [#allocation6], %s3145_s27, %s3145_s27, %s3146_s28  }
  0x13   :  { %s3147_s12 = smov [#allocation2]   ;;  %s3148_s14 = smov [#allocation7]  }
  0x14   :  { %s27_s13 = sshll.u32 %s3147_s12, 4  ;;  %s60_s15 = sshll.u32 %s3148_s14, 4  ;;  %s28_s13 = int_to_ptr.vmem [resolvable:$true] %s27_s13  ;;  %s61_s15 = int_to_ptr.vmem [resolvable:$true] %s60_s15 }
  0x15   :  { %s3072_s19 = scalar_lea.hbm %s3880_s1, 128 }
  0x16   :  { %p3073_p8 = scmp.ne.s32.totalorder %s3880_s1, %s3072_s19  ;;  %p3076_p9 = scmp.lt.u32.totalorder %s3072_s19, %s3880_s1 }
  0x18   :  { %p3078_p10 = pnand %p3076_p9, %p3073_p8 }
  0x1a   :  { %3081 = shalt.err (!%p3078_p10)
}
  0x1b   :  { %s3082_s7 = scalar_lea.vmem %s28_s13, 128  ;;  %p3087_p12 = scmp.lt.s32.totalorder %s28_s13, %s28_s13 }
  0x1c   :  { %p3083_p11 = scmp.ne.s32.totalorder %s28_s13, %s3082_s7  ;;  %p3088_p13 = scmp.lt.s32.totalorder %s3082_s7, %s3082_s7 }
  0x1e   :  { %p3089_p0 = por %p3088_p13, %p3087_p12 }
  0x20   :  { %p3090_p1 = pnand %p3089_p0, %p3083_p11 }
  0x22   :  { %3093 = shalt.err (!%p3090_p1)
}
  0x23   :  { %30 = dma.hbm_to_vmem [thread:$0]  %s3880_s1, 128, %s28_s13, [#allocation3]  }
  0x24   :  { %s3094_s29 = scalar_lea.hbm %s3888_s9, 2048 }
  0x25   :  { %p3095_p2 = scmp.ne.s32.totalorder %s3888_s9, %s3094_s29  ;;  %p3098_p3 = scmp.lt.u32.totalorder %s3094_s29, %s3888_s9 }
  0x27   :  { %p3100_p4 = pnand %p3098_p3, %p3095_p2 }
  0x29   :  { %3103 = shalt.err (!%p3100_p4)
}
  0x2a   :  { %s3104_s17 = scalar_lea.vmem %s61_s15, 2048  ;;  %p3109_p6 = scmp.lt.s32.totalorder %s61_s15, %s61_s15 }
  0x2b   :  { %p3105_p5 = scmp.ne.s32.totalorder %s61_s15, %s3104_s17  ;;  %p3110_p7 = scmp.lt.s32.totalorder %s3104_s17, %s3104_s17 }
  0x2d   :  { %p3111_p8 = por %p3110_p7, %p3109_p6 }
  0x2f   :  { %p3112_p9 = pnand %p3111_p8, %p3105_p5 }
  0x31   :  { %3115 = shalt.err (!%p3112_p9)
}
  0x32   :  { %66 = dma.hbm_to_vmem [thread:$0]  %s3888_s9, 2048, %s61_s15, [#allocation6], %s3145_s27, %s3145_s27, %s3146_s28  }
  0x33   :  { %3138 = dma.done.wait [#allocation3], 128  }
  0x34   :  { %3139 = vsyncadd [#allocation3], 4294967168 }
  0x35   :  { %3140 = dma.done.wait [#allocation6], 4096  }
  0x36   :  { %3141 = vsyncadd [#allocation6], 4294963200  ;;  %v3149_v0 = vmov 0.0|0.0   ;;  %vm3150_vm0 = vmmov 0   ;;  %v3151_v1 = vmov 0.0   ;;  %v3152_v2 = vmov 0  }
  0x37   :  { %2687 = vmatprep.subr.bf16.mxu0 %v3149_v0  ;;  %2693 = vmatprep.subr.bf16.mxu1 %v3149_v0  ;;  %vm97_vm1 = vcmask 261120   ;;  %v79_v3 = vld [vmem:[%s3883_s4] sm:$0xff]  ;;  %v80_v4 = vld [vmem:[%s3883_s4 + $0x8] sm:$0xff]  ;;  %v81_v5 = vld [vmem:[%s3883_s4 + $0x10] sm:$0xff]  ;;  %s3153_s30 = smov [#allocation8]  }
  0x38   :  { %2209 = vmatprep.mubr.msk.f32.mxu0 %vm3150_vm0, %v3151_v1  ;;  %2220 = vmatprep.mubr.msk.f32.mxu1 %vm3150_vm0, %v3151_v1  ;;  %v102_v6 = vand.u32 4294901760, %v79_v3  ;;  %v105_v7 = vand.u32 4294901760, %v80_v4  ;;  %v82_v8 = vld [vmem:[%s3883_s4 + $0x18] sm:$0xff]  ;;  %v108_v9 = vand.u32 4294901760, %v81_v5  ;;  %v78_v10 = vld [vmem:[#allocation2] sm:$0xff]  ;;  %v610_v44 = vld [vmem:[#allocation5] sm:$0xff] }
  0x39   :  { %3043 = vset.pattern.permute.xlu0 %v3152_v2  ;;  %v83_v11 = vld [vmem:[%s3879_s0] sm:$0xff]  ;;  %v111_v12 = vand.u32 4294901760, %v82_v8  ;;  %v99_v13 = vsel %vm97_vm1, %v78_v10, 0  ;;  %v611_v45 = vld [vmem:[#allocation5 + $0x8] sm:$0xff]  ;;  %v634_v46 = vand.u32 4294901760, %v610_v44  ;;  %v612_v49 = vld [vmem:[#allocation5 + $0x10] sm:$0xff] }
  0x3a   :  { %87 = vperm.xlu0 %3043, %v83_v11   ;;  %v2688_v14 = vpack.c.bf16 %v105_v7, %v102_v6  ;;  %v182_v15 = vsub.f32 %v79_v3, %v102_v6  ;;  %v189_v16 = vsub.f32 %v80_v4, %v105_v7  ;;  %v196_v17 = vsub.f32 %v81_v5, %v108_v9  ;;  %v586_v18 = vld [vmem:[%s3881_s2] sm:$0xff]  ;;  %v614_v58 = vld [vmem:[#allocation5 + $0x20] sm:$0xff]  ;;  %v615_v59 = vld [vmem:[#allocation5 + $0x28] sm:$0xff]  ;;  %s1952_s12 = sshll.u32 %s3153_s30, 4  ;;  %s1953_s12 = int_to_ptr.vmem [resolvable:$true] %s1952_s12 }
  0x3b   :  { %v203_v19 = vsub.f32 %v82_v8, %v111_v12  ;;  %v170_v20 = vand.u32 4294901760, %v99_v13  ;;  %v2691_v21 = vpack.c.bf16 %v111_v12, %v108_v9  ;;  %v637_v47 = vand.u32 4294901760, %v611_v45  ;;  %v613_v50 = vld [vmem:[#allocation5 + $0x18] sm:$0xff]  ;;  %v616_v63 = vld [vmem:[#allocation5 + $0x30] sm:$0xff]  ;;  %v618_v10 = vld [vmem:[#allocation5 + $0x40] sm:$0xff]  ;;  %s3116_s14 = scalar_lea.vmem %s1953_s12, 128  ;;  %p3121_p11 = scmp.lt.s32.totalorder %s1953_s12, %s1953_s12 }
  0x3c   :  { %2689 = vmatpush3.bf16.msra.mxu0 %v2688_v14  ;;  %v183_v22 = vand.u32 4294901760, %v182_v15  ;;  %v190_v23 = vand.u32 4294901760, %v189_v16  ;;  %v197_v24 = vand.u32 4294901760, %v196_v17  ;;  %v2700_v38 = vpack.c.bf16 %v189_v16, %v182_v15  ;;  %v617_v2 = vld [vmem:[#allocation5 + $0x38] sm:$0xff]  ;;  %v619_v11 = vld [vmem:[#allocation5 + $0x48] sm:$0xff]  ;;  %p3117_p10 = scmp.ne.s32.totalorder %s1953_s12, %s3116_s14  ;;  %p3122_p12 = scmp.lt.s32.totalorder %s3116_s14, %s3116_s14 }
  0x3d   :  { %2690 = vmatprep.subr.bf16.mxu0 %v3149_v0  ;;  %v171_v25 = vsub.f32 %v99_v13, %v170_v20  ;;  %v204_v26 = vand.u32 4294901760, %v203_v19  ;;  %v2703_v41 = vpack.c.bf16 %v203_v19, %v196_v17  ;;  %v3304_v48 = vpack.c.bf16 %v637_v47, %v634_v46 }
  0x3e   :  { %590 = vperm.xlu0 %3043, %v586_v18   ;;  %v184_v27 = vsub.f32 %v182_v15, %v183_v22  ;;  %v191_v28 = vsub.f32 %v189_v16, %v190_v23  ;;  %v198_v29 = vsub.f32 %v196_v17, %v197_v24  ;;  %v2712_v42 = vpack.c.bf16 %v190_v23, %v183_v22  ;;  %v620_v15 = vld [vmem:[#allocation5 + $0x50] sm:$0xff]  ;;  %v621_v16 = vld [vmem:[#allocation5 + $0x58] sm:$0xff]  ;;  %p3123_p13 = por %p3122_p12, %p3121_p11 }
  0x3f   :  { %v172_v30 = vand.u32 4294901760, %v171_v25  ;;  %v205_v31 = vsub.f32 %v203_v19, %v204_v26  ;;  %v2715_v43 = vpack.c.bf16 %v204_v26, %v197_v24  ;;  %v3307_v51 = vsub.f32 %v610_v44, %v634_v46  ;;  %v625_v26 = vld [vmem:[#allocation5 + $0x78] sm:$0xff] }
  0x40   :  { %2692 = vmatpush3.bf16.msra.mxu0 %v2691_v21  ;;  %v185_v32 = vand.u32 4294901760, %v184_v27  ;;  %v192_v33 = vand.u32 4294901760, %v191_v28  ;;  %v199_v34 = vand.u32 4294901760, %v198_v29  ;;  %v3309_v52 = vsub.f32 %v611_v45, %v637_v47  ;;  %p3124_p0 = pnand %p3123_p13, %p3117_p10 }
  0x41   :  { %2699 = vmatprep.subr.bf16.mxu0 %v3149_v0  ;;  %v173_v35 = vsub.f32 %v171_v25, %v172_v30  ;;  %v206_v36 = vand.u32 4294901760, %v205_v31  ;;  %v640_v53 = vand.u32 4294901760, %v612_v49  ;;  %v643_v54 = vand.u32 4294901760, %v613_v50 }
  0x42   :  { %v2694_v37 = vpack.c.bf16 %v192_v33, %v185_v32  ;;  %v646_v60 = vand.u32 4294901760, %v614_v58  ;;  %v649_v61 = vand.u32 4294901760, %v615_v59  ;;  %v652_v5 = vand.u32 4294901760, %v616_v63 }
  0x43   :  { %v174_v39 = vand.u32 4294901760, %v173_v35  ;;  %v2697_v40 = vpack.c.bf16 %v206_v36, %v199_v34  ;;  %v3312_v55 = vpack.c.bf16 %v643_v54, %v640_v53  ;;  %v3314_v56 = vsub.f32 %v612_v49, %v640_v53 }
  0x44   :  { %2695 = vmatpush3.bf16.msra.mxu1 %v2694_v37  ;;  %v3316_v57 = vsub.f32 %v613_v50, %v643_v54  ;;  %v3320_v62 = vpack.c.bf16 %v649_v61, %v646_v60  ;;  %v3323_v3 = vsub.f32 %v614_v58, %v646_v60  ;;  %v3325_v4 = vsub.f32 %v615_v59, %v649_v61 }
  0x45   :  { %2210 = vmatmul.mubr.f32.vlgmr.msra.gmra.mrb[0].mxu0 %v174_v39  ;;  %2696 = vmatprep.subr.bf16.mxu1 %v3149_v0  ;;  %v655_v6 = vand.u32 4294901760, %v617_v2  ;;  %v3330_v8 = vsub.f32 %v616_v63, %v652_v5  ;;  %v658_v12 = vand.u32 4294901760, %v618_v10  ;;  %v661_v13 = vand.u32 4294901760, %v619_v11 }
  0x46   :  { %2701 = vmatpush3.bf16.msra.mxu0 %v2700_v38  ;;  %2231 = vmatprep.mubr.msk.f32.mxu0 %vm3150_vm0, %v3151_v1  ;;  %v664_v17 = vand.u32 4294901760, %v620_v15  ;;  %v667_v18 = vand.u32 4294901760, %v621_v16  ;;  %v679_v34 = vand.u32 4294901760, %v625_v26  ;;  %v727_v35 = vand.u32 4294901760, %v3307_v51 }
  0x47   :  { %2702 = vmatprep.subr.bf16.mxu0 %v3149_v0  ;;  %v3328_v7 = vpack.c.bf16 %v655_v6, %v652_v5  ;;  %v3332_v9 = vsub.f32 %v617_v2, %v655_v6  ;;  %v3346_v27 = vsub.f32 %v618_v10, %v658_v12  ;;  %v3348_v28 = vsub.f32 %v619_v11, %v661_v13 }
  0x48   :  { %2698 = vmatpush3.bf16.msra.mxu1 %v2697_v40  ;;  %v3340_v19 = vpack.c.bf16 %v667_v18, %v664_v17  ;;  %v3350_v29 = vsub.f32 %v620_v15, %v664_v17  ;;  %v734_v36 = vand.u32 4294901760, %v3309_v52  ;;  %v3366_v39 = vsub.f32 %v625_v26, %v679_v34 }
  0x49   :  { %2705 = vmatprep.subr.bf16.mxu1 %v3149_v0  ;;  %v728_v40 = vsub.f32 %v3307_v51, %v727_v35  ;;  %v3902_v54 = vand.u32 4294901760, %v3323_v3  ;;  %v3901_v58 = vand.u32 4294901760, %v3325_v4  ;;  %v3900_v2 = vand.u32 4294901760, %v3330_v8 }
  0x4a   :  { %2704 = vmatpush3.bf16.msra.mxu0 %v2703_v41  ;;  %v735_v41 = vsub.f32 %v3309_v52, %v734_v36  ;;  %v3899_v5 = vand.u32 4294901760, %v3332_v9  ;;  %v3897_v17 = vand.u32 4294901760, %v3348_v28 }
  0x4b   :  { %2221 = vmatmul.mubr.f32.vlgmr.msra.gmra.mrb[0].mxu1 %v170_v20  ;;  %2711 = vmatprep.subr.bf16.mxu0 %v3149_v0  ;;  %v729_v44 = vand.u32 4294901760, %v728_v40  ;;  %v756_v60 = vsub.f32 %v3323_v3, %v3902_v54  ;;  %v763_v61 = vsub.f32 %v3325_v4, %v3901_v58  ;;  %v770_v10 = vsub.f32 %v3330_v8, %v3900_v2 }
  0x4c   :  { %2707 = vmatpush3.bf16.msra.mxu1 %v2688_v14  ;;  %2242 = vmatprep.mubr.msk.f32.mxu1 %vm3150_vm0, %v3151_v1  ;;  %v736_v45 = vand.u32 4294901760, %v735_v41  ;;  %v777_v11 = vsub.f32 %v3332_v9, %v3899_v5 }
  0x4d   :  { %2232 = vmatmul.mubr.f32.vlgmr.msra.gmra.mrb[2].mxu0 %v171_v25  ;;  %2708 = vmatprep.subr.bf16.mxu1 %v3149_v0  ;;  %v624_v25 = vld [vmem:[#allocation5 + $0x70] sm:$0xff]  ;;  %v757_v63 = vand.u32 4294901760, %v756_v60  ;;  %v764_v6 = vand.u32 4294901760, %v763_v61 }
  0x4e   :  { %2713 = vmatpush3.bf16.msra.mxu0 %v2712_v42  ;;  %2253 = vmatprep.mubr.msk.f32.mxu0 %vm3150_vm0, %v3151_v1  ;;  %v676_v33 = vand.u32 4294901760, %v624_v25  ;;  %v741_v42 = vand.u32 4294901760, %v3314_v56  ;;  %v3384_v49 = vpack.c.bf16 %v736_v45, %v729_v44  ;;  %v778_v15 = vand.u32 4294901760, %v777_v11 }
  0x4f   :  { %2714 = vmatprep.subr.bf16.mxu0 %v3149_v0 }
  0x50   :  { %2710 = vmatpush3.bf16.msra.mxu1 %v2691_v21  ;;  %v3362_v37 = vsub.f32 %v624_v25, %v676_v33  ;;  %v3364_v38 = vpack.c.bf16 %v679_v34, %v676_v33  ;;  %v742_v46 = vsub.f32 %v3314_v56, %v741_v42  ;;  %v3896_v25 = vand.u32 4294901760, %v3350_v29 }
  0x51   :  { %2717 = vmatprep.subr.bf16.mxu1 %v3149_v0 }
  0x52   :  { %2716 = vmatpush3.bf16.msra.mxu0 %v2715_v43  ;;  %v3903_v43 = vand.u32 4294901760, %v3316_v57  ;;  %v743_v50 = vand.u32 4294901760, %v742_v46  ;;  %v798_v34 = vsub.f32 %v3350_v29, %v3896_v25 }
  0x53   :  { %2243 = vmatmul.mubr.f32.vlgmr.msra.gmra.mrb[2].mxu1 %v172_v30  ;;  %2723 = vmatprep.subr.bf16.mxu0 %v3149_v0  ;;  %v3353_v30 = vsub.f32 %v621_v16, %v667_v18  ;;  %v3898_v16 = vand.u32 4294901760, %v3346_v27 }
  0x54   :  { %2719 = vmatpush3.bf16.msra.mxu1 %v2688_v14  ;;  %2264 = vmatprep.mubr.msk.f32.mxu1 %vm3150_vm0, %v3151_v1  ;;  %v3336_v14 = vpack.c.bf16 %v661_v13, %v658_v12  ;;  %v749_v47 = vsub.f32 %v3316_v57, %v3903_v43  ;;  %v3404_v12 = vpack.c.bf16 %v764_v6, %v757_v63  ;;  %v771_v13 = vand.u32 4294901760, %v770_v10  ;;  %v1963_v43 = vld [vmem:[%s3884_s5] ss:$0 sm:$0xff] }
  0x55   :  { %2254 = vmatmul.mubr.f32.vlgmr.msra.gmra.mrb[4].mxu0 %v170_v20  ;;  %2720 = vmatprep.subr.bf16.mxu1 %v3149_v0  ;;  %v3895_v26 = vand.u32 4294901760, %v3353_v30  ;;  %v799_v41 = vand.u32 4294901760, %v798_v34  ;;  %v3892_v63 = vand.u32 4294901760, %v3362_v37  ;;  %v3891_v6 = vand.u32 4294901760, %v3366_v39 }
  0x56   :  { %2299 = vmatprep.mubr.msk.f32.mxu0 %vm3150_vm0, %v3151_v1  ;;  %2725 = vmatpush3.bf16.msra.mxu0 %v3304_v48  ;;  %v750_v53 = vand.u32 4294901760, %v749_v47  ;;  %v3408_v18 = vpack.c.bf16 %v778_v15, %v771_v13  ;;  %v2778_v34 = vpack.c.bf16 %v3325_v4, %v3323_v3 }
  0x57   :  { %2726 = vmatprep.subr.bf16.mxu0 %v3149_v0  ;;  %v805_v40 = vsub.f32 %v3353_v30, %v3895_v26  ;;  %v826_v11 = vsub.f32 %v3362_v37, %v3892_v63  ;;  %v833_v13 = vsub.f32 %v3366_v39, %v3891_v6 }
  0x58   :  { %2722 = vmatpush3.bf16.msra.mxu1 %v2691_v21  ;;  %v623_v21 = vld [vmem:[#allocation5 + $0x68] sm:$0xff]  ;;  %v3388_v59 = vpack.c.bf16 %v750_v53, %v743_v50 }
  0x59   :  { %2867 = vmatprep.subr.bf16.mxu1 %v3149_v0  ;;  %v673_v23 = vand.u32 4294901760, %v623_v21  ;;  %v806_v44 = vand.u32 4294901760, %v805_v40  ;;  %v827_v15 = vand.u32 4294901760, %v826_v11  ;;  %v2781_v40 = vpack.c.bf16 %v3332_v9, %v3330_v8 }
  0x5a   :  { %2728 = vmatpush3.bf16.msra.mxu0 %v3312_v55 }
  0x5b   :  { %2265 = vmatmul.mubr.f32.vlgmr.msra.gmra.mrb[4].mxu1 %v170_v20  ;;  %2729 = vmatprep.subr.bf16.mxu0 %v3149_v0  ;;  %v622_v20 = vld [vmem:[#allocation5 + $0x60] sm:$0xff]  ;;  %v3357_v32 = vsub.f32 %v623_v21, %v673_v23  ;;  %v791_v21 = vsub.f32 %v3348_v28, %v3897_v17  ;;  %v3428_v47 = vpack.c.bf16 %v806_v44, %v799_v41 }
  0x5c   :  { %2509 = vmatprep.mubr.msk.f32.mxu1 %vm3150_vm0, %v3151_v1  ;;  %v670_v22 = vand.u32 4294901760, %v622_v20  ;;  %v2784_v41 = vpack.c.bf16 %v3348_v28, %v3346_v27  ;;  %v2787_v44 = vpack.c.bf16 %v3353_v30, %v3350_v29 }
  0x5d   :  { %v3893_v46 = vand.u32 4294901760, %v3357_v32 }
  0x5e   :  { %2731 = vmatpush3.bf16.msra.mxu0 %v3320_v62  ;;  %v3344_v24 = vpack.c.bf16 %v673_v23, %v670_v22  ;;  %v3355_v31 = vsub.f32 %v622_v20, %v670_v22  ;;  %v784_v20 = vsub.f32 %v3346_v27, %v3898_v16  ;;  %v792_v23 = vand.u32 4294901760, %v791_v21 }
  0x5f   :  { %2732 = vmatprep.subr.bf16.mxu0 %v3149_v0  ;;  %v819_v53 = vsub.f32 %v3357_v32, %v3893_v46 }
  0x60   :  { %v785_v22 = vand.u32 4294901760, %v784_v20  ;;  %v3894_v45 = vand.u32 4294901760, %v3355_v31  ;;  %v834_v20 = vand.u32 4294901760, %v833_v13 }
  0x61   :  { %v820_v61 = vand.u32 4294901760, %v819_v53  ;;  %v2793_v53 = vpack.c.bf16 %v3366_v39, %v3362_v37 }
  0x62   :  { %2734 = vmatpush3.bf16.msra.mxu0 %v3328_v7  ;;  %v3418_v33 = vpack.c.bf16 %v792_v23, %v785_v22  ;;  %v812_v50 = vsub.f32 %v3355_v31, %v3894_v45  ;;  %v2769_v21 = vpack.c.bf16 %v834_v20, %v827_v15  ;;  %v2772_v22 = vpack.c.bf16 %v3309_v52, %v3307_v51 }
  0x63   :  { %2735 = vmatprep.subr.bf16.mxu0 %v3149_v0  ;;  %v2775_v23 = vpack.c.bf16 %v3316_v57, %v3314_v56  ;;  %v3909_v51 = vand.u32 4294901760, %v3323_v3  ;;  %v3910_v52 = vand.u32 4294901760, %v3325_v4  ;;  %v3912_v56 = vand.u32 4294901760, %v3332_v9 }
  0x64   :  { %v813_v60 = vand.u32 4294901760, %v812_v50  ;;  %v2790_v50 = vpack.c.bf16 %v3357_v32, %v3355_v31  ;;  %v3915_v3 = vand.u32 4294901760, %v3350_v29  ;;  %v3916_v4 = vand.u32 4294901760, %v3353_v30  ;;  %v1282_v30 = vld [vmem:[#allocation7 + $0x38] sm:$0xff] }
  0x65   :  { %v3918_v9 = vand.u32 4294901760, %v3357_v32  ;;  %v1283_v32 = vld [vmem:[#allocation7 + $0x40] sm:$0xff] }
  0x66   :  { %2737 = vmatpush3.bf16.msra.mxu0 %v3336_v14  ;;  %v2766_v10 = vpack.c.bf16 %v820_v61, %v813_v60  ;;  %v1962_v60 = vld [vmem:[%s3882_s3] ss:$0 sm:$0xff] }
  0x67   :  { %2738 = vmatprep.subr.bf16.mxu0 %v3149_v0 }
  0x6a   :  { %2740 = vmatpush3.bf16.msra.mxu0 %v3340_v19 }
  0x6b   :  { %2741 = vmatprep.subr.bf16.mxu0 %v3149_v0 }
  0x6e   :  { %2743 = vmatpush3.bf16.msra.mxu0 %v3344_v24 }
  0x6f   :  { %2744 = vmatprep.subr.bf16.mxu0 %v3149_v0 }
  0x72   :  { %2746 = vmatpush3.bf16.msra.mxu0 %v3364_v38 }
  0x73   :  { %2747 = vmatprep.subr.bf16.mxu0 %v3149_v0 }
  0xb9   :  { %v88_v61 = vpop.permute.xlu0 %87 }
  0xba   :  { %v96_v11 = vmul.f32 %v1962_v60, %v88_v61 }
  0xbd   :  { %v591_v60 = vpop.permute.xlu0 %590 }
 0x118   :  { %v176_v13 = vpop.f32.mrb[0].mxu0 }
 0x119   :  { %v2211_v15 = vpop.f32.mrb[1].mxu0  ;;  %v177_v20 = vadd.f32 %v176_v13, %v96_v11 }
 0x11a   :  { %v599_v15 = vmul.f32 %v1963_v43, %v591_v60 }
 0x11e   :  { %v267_v6 = vpop.f32.mrb[0].mxu1 }
 0x11f   :  { %v268_v63 = vadd.f32 %v267_v6, %v177_v20  ;;  %v2222_v46 = vpop.f32.mrb[1].mxu1 }
 0x120   :  { %v347_v45 = vpop.f32.mrb[2].mxu0 }
 0x121   :  { %v348_v26 = vadd.f32 %v347_v45, %v268_v63  ;;  %v2233_v25 = vpop.f32.mrb[3].mxu0  ;;  %v1964_v45 = vld [vmem:[%s3885_s6] ss:$0 sm:$0xff] }
 0x126   :  { %v424_v17 = vpop.f32.mrb[2].mxu1 }
 0x127   :  { %v425_v16 = vadd.f32 %v424_v17, %v348_v26  ;;  %v2244_v5 = vpop.f32.mrb[3].mxu1  ;;  %v1278_v26 = vld [vmem:[#allocation7 + $0x18] sm:$0xff] }
 0x128   :  { %v507_v2 = vpop.f32.mrb[4].mxu0 }
 0x129   :  { %v508_v58 = vadd.f32 %v507_v2, %v425_v16  ;;  %v2255_v54 = vpop.f32.mrb[5].mxu0 }
 0x12e   :  { %v582_v61 = vpop.f32.mrb[4].mxu1 }
 0x12f   :  { %v583_v11 = vadd.f32 %v582_v61, %v508_v58  ;;  %v2266_v13 = vpop.f32.mrb[5].mxu1 }
 0x131   :  { %v600_v25 = vadd.f32 %v599_v15, %v583_v11  ;;  %v1285_v15 = vld [vmem:[#allocation7 + $0x50] sm:$0xff]  ;;  %v1286_v11 = vld [vmem:[#allocation7 + $0x58] sm:$0xff] }
 0x132   :  { %v1329_v13 = vand.u32 4294901760, %v1285_v15 }
 0x133   :  { %v608_v46 = vadd.f32 %v1964_v45, %v600_v25  ;;  %v1332_v45 = vand.u32 4294901760, %v1286_v11 }
 0x135   :  { %v609_v17 = vmax.f32 %v608_v46, 0.0  ;;  %v3636_v25 = vpack.c.bf16 %v1332_v45, %v1329_v13  ;;  %v1287_v46 = vld [vmem:[#allocation7 + $0x60] sm:$0xff] }
 0x137   :  { %v3469_v5 = vand.u32 4294901760, %v609_v17 }
 0x139   :  { %v3472_v54 = vsub.f32 %v609_v17, %v3469_v5  ;;  %v1288_v17 = vld [vmem:[#allocation7 + $0x68] sm:$0xff] }
 0x13b   :  { %v716_v2 = vand.u32 4294901760, %v3472_v54 }
 0x13d   :  { %v717_v43 = vsub.f32 %v3472_v54, %v716_v2 }
 0x13f   :  { %v718_v58 = vand.u32 4294901760, %v717_v43  ;;  %v1289_v43 = vld [vmem:[#allocation7 + $0x70] sm:$0xff] }
 0x141   :  { %2300 = vmatmul.mubr.f32.vlgmr.msra.gmra.mrb[6].mxu0 %v718_v58  ;;  %v1290_v58 = vld [vmem:[#allocation7 + $0x78] sm:$0xff] }
 0x142   :  { %2749 = vmatpush3.bf16.msra.mxu0 %v3384_v49  ;;  %2334 = vmatprep.mubr.msk.f32.mxu0 %vm3150_vm0, %v3151_v1  ;;  %v1275_v49 = vld [vmem:[#allocation7] sm:$0xff] }
 0x143   :  { %2750 = vmatprep.subr.bf16.mxu0 %v3149_v0  ;;  %v1299_v16 = vand.u32 4294901760, %v1275_v49 }
 0x145   :  { %v3500_v6 = vsub.f32 %v1275_v49, %v1299_v16 }
 0x146   :  { %2752 = vmatpush3.bf16.msra.mxu0 %v3388_v59  ;;  %v1276_v59 = vld [vmem:[#allocation7 + $0x8] sm:$0xff] }
 0x147   :  { %2753 = vmatprep.subr.bf16.mxu0 %v3149_v0 }
 0x14a   :  { %2755 = vmatpush3.bf16.msra.mxu0 %v3404_v12  ;;  %v1277_v12 = vld [vmem:[#allocation7 + $0x10] sm:$0xff] }
 0x14b   :  { %2756 = vmatprep.subr.bf16.mxu0 %v3149_v0 }
 0x14e   :  { %2758 = vmatpush3.bf16.msra.mxu0 %v3408_v18  ;;  %v1302_v18 = vand.u32 4294901760, %v1276_v59 }
 0x14f   :  { %2759 = vmatprep.subr.bf16.mxu0 %v3149_v0 }
 0x150   :  { %v3498_v63 = vpack.c.bf16 %v1302_v18, %v1299_v16 }
 0x152   :  { %2761 = vmatpush3.bf16.msra.mxu0 %v3418_v33  ;;  %v1305_v33 = vand.u32 4294901760, %v1277_v12  ;;  %2869 = vmatpush3.bf16.msra.mxu1 %v3498_v63 }
 0x153   :  { %2762 = vmatprep.subr.bf16.mxu0 %v3149_v0  ;;  %2870 = vmatprep.subr.bf16.mxu1 %v3149_v0 }
 0x156   :  { %2764 = vmatpush3.bf16.msra.mxu0 %v3428_v47  ;;  %v1308_v47 = vand.u32 4294901760, %v1278_v26 }
 0x157   :  { %2765 = vmatprep.subr.bf16.mxu0 %v3149_v0 }
 0x158   :  { %v3506_v20 = vsub.f32 %v1278_v26, %v1308_v47 }
 0x15a   :  { %2767 = vmatpush3.bf16.msra.mxu0 %v2766_v10  ;;  %v3502_v10 = vsub.f32 %v1276_v59, %v1302_v18 }
 0x15b   :  { %2768 = vmatprep.subr.bf16.mxu0 %v3149_v0 }
 0x15e   :  { %2770 = vmatpush3.bf16.msra.mxu0 %v2769_v21  ;;  %v3504_v21 = vsub.f32 %v1277_v12, %v1305_v33 }
 0x15f   :  { %2771 = vmatprep.subr.bf16.mxu0 %v3149_v0 }
 0x161   :  { %2335 = vmatmul.mubr.f32.vlgmr.msra.gmra.mrb[6].mxu0 %v3469_v5 }
 0x162   :  { %2773 = vmatpush3.bf16.msra.mxu0 %v2772_v22  ;;  %2369 = vmatprep.mubr.msk.f32.mxu0 %vm3150_vm0, %v3151_v1  ;;  %v3512_v22 = vpack.c.bf16 %v1308_v47, %v1305_v33  ;;  %v3655_v33 = vsub.f32 %v1285_v15, %v1329_v13  ;;  %v3657_v47 = vsub.f32 %v1286_v11, %v1332_v45 }
 0x163   :  { %2774 = vmatprep.subr.bf16.mxu0 %v3149_v0 }
 0x164   :  { %2872 = vmatpush3.bf16.msra.mxu1 %v3512_v22 }
 0x165   :  { %2873 = vmatprep.subr.bf16.mxu1 %v3149_v0 }
 0x166   :  { %2776 = vmatpush3.bf16.msra.mxu0 %v2775_v23  ;;  %v2820_v23 = vpack.c.bf16 %v734_v36, %v727_v35  ;;  %v2826_v35 = vpack.c.bf16 %v3910_v52, %v3909_v51  ;;  %v3911_v36 = vand.u32 4294901760, %v3330_v8  ;;  %v3917_v8 = vand.u32 4294901760, %v3355_v31 }
 0x167   :  { %2777 = vmatprep.subr.bf16.mxu0 %v3149_v0  ;;  %v1320_v31 = vand.u32 4294901760, %v1282_v30  ;;  %v1344_v51 = vand.u32 4294901760, %v1290_v58  ;;  %v1392_v52 = vand.u32 4294901760, %v3500_v6 }
 0x169   :  { %v3648_v16 = vsub.f32 %v1282_v30, %v1320_v31 }
 0x16a   :  { %2779 = vmatpush3.bf16.msra.mxu0 %v2778_v34  ;;  %v3908_v34 = vand.u32 4294901760, %v3316_v57  ;;  %v2829_v57 = vpack.c.bf16 %v3912_v56, %v3911_v36 }
 0x16b   :  { %2780 = vmatprep.subr.bf16.mxu0 %v3149_v0 }
 0x16e   :  { %2782 = vmatpush3.bf16.msra.mxu0 %v2781_v40  ;;  %v2823_v40 = vpack.c.bf16 %v3908_v34, %v741_v42  ;;  %v3913_v42 = vand.u32 4294901760, %v3346_v27  ;;  %v3919_v27 = vand.u32 4294901760, %v3362_v37  ;;  %v1284_v37 = vld [vmem:[#allocation7 + $0x48] sm:$0xff] }
 0x16f   :  { %2783 = vmatprep.subr.bf16.mxu0 %v3149_v0 }
 0x172   :  { %2785 = vmatpush3.bf16.msra.mxu0 %v2784_v41  ;;  %v3914_v41 = vand.u32 4294901760, %v3348_v28  ;;  %v3920_v28 = vand.u32 4294901760, %v3366_v39  ;;  %v1326_v39 = vand.u32 4294901760, %v1284_v37 }
 0x173   :  { %2786 = vmatprep.subr.bf16.mxu0 %v3149_v0 }
 0x174   :  { %v2841_v60 = vpack.c.bf16 %v3920_v28, %v3919_v27  ;;  %v3653_v26 = vsub.f32 %v1284_v37, %v1326_v39 }
 0x176   :  { %2788 = vmatpush3.bf16.msra.mxu0 %v2787_v44  ;;  %v2832_v44 = vpack.c.bf16 %v3914_v41, %v3913_v42  ;;  %v1393_v42 = vsub.f32 %v3500_v6, %v1392_v52  ;;  %v1455_v13 = vand.u32 4294901760, %v3653_v26 }
 0x177   :  { %2789 = vmatprep.subr.bf16.mxu0 %v3149_v0 }
 0x17a   :  { %2791 = vmatpush3.bf16.msra.mxu0 %v2790_v50  ;;  %v2835_v50 = vpack.c.bf16 %v3916_v4, %v3915_v3  ;;  %v1413_v3 = vand.u32 4294901760, %v3506_v20  ;;  %v1394_v4 = vand.u32 4294901760, %v1393_v42 }
 0x17b   :  { %2792 = vmatprep.subr.bf16.mxu0 %v3149_v0 }
 0x17e   :  { %2794 = vmatpush3.bf16.msra.mxu0 %v2793_v53  ;;  %v2838_v53 = vpack.c.bf16 %v3918_v9, %v3917_v8  ;;  %v1414_v9 = vsub.f32 %v3506_v20, %v1413_v3 }
 0x17f   :  { %2795 = vmatprep.subr.bf16.mxu0 %v3149_v0 }
 0x180   :  { %v1415_v28 = vand.u32 4294901760, %v1414_v9 }
 0x181   :  { %2370 = vmatmul.mubr.f32.vlgmr.msra.gmra.mrb[6].mxu0 %v3472_v54  ;;  %v1338_v54 = vand.u32 4294901760, %v1288_v17 }
 0x182   :  { %2797 = vmatpush3.bf16.msra.mxu0 %v3304_v48  ;;  %2404 = vmatprep.mubr.msk.f32.mxu0 %vm3150_vm0, %v3151_v1 }
 0x183   :  { %2798 = vmatprep.subr.bf16.mxu0 %v3149_v0  ;;  %v3662_v34 = vsub.f32 %v1288_v17, %v1338_v54  ;;  %v1456_v17 = vsub.f32 %v3653_v26, %v1455_v13 }
 0x186   :  { %2800 = vmatpush3.bf16.msra.mxu0 %v3312_v55 }
 0x187   :  { %2801 = vmatprep.subr.bf16.mxu0 %v3149_v0 }
 0x18a   :  { %2803 = vmatpush3.bf16.msra.mxu0 %v3320_v62 }
 0x18b   :  { %2804 = vmatprep.subr.bf16.mxu0 %v3149_v0 }
 0x18e   :  { %2806 = vmatpush3.bf16.msra.mxu0 %v3328_v7 }
 0x18f   :  { %2807 = vmatprep.subr.bf16.mxu0 %v3149_v0 }
 0x192   :  { %2809 = vmatpush3.bf16.msra.mxu0 %v3336_v14 }
 0x193   :  { %2810 = vmatprep.subr.bf16.mxu0 %v3149_v0 }
 0x196   :  { %2812 = vmatpush3.bf16.msra.mxu0 %v3340_v19 }
 0x197   :  { %2813 = vmatprep.subr.bf16.mxu0 %v3149_v0 }
 0x19a   :  { %2815 = vmatpush3.bf16.msra.mxu0 %v3344_v24 }
 0x19b   :  { %2816 = vmatprep.subr.bf16.mxu0 %v3149_v0 }
 0x19e   :  { %2818 = vmatpush3.bf16.msra.mxu0 %v3364_v38 }
 0x19f   :  { %2819 = vmatprep.subr.bf16.mxu0 %v3149_v0 }
 0x1a1   :  { %2405 = vmatmul.mubr.f32.vlgmr.msra.gmra.mrb[6].mxu0 %v716_v2 }
 0x1a2   :  { %2821 = vmatpush3.bf16.msra.mxu0 %v2820_v23  ;;  %2439 = vmatprep.mubr.msk.f32.mxu0 %vm3150_vm0, %v3151_v1 }
 0x1a3   :  { %2822 = vmatprep.subr.bf16.mxu0 %v3149_v0 }
 0x1a6   :  { %2824 = vmatpush3.bf16.msra.mxu0 %v2823_v40  ;;  %v1341_v40 = vand.u32 4294901760, %v1289_v43 }
 0x1a7   :  { %2825 = vmatprep.subr.bf16.mxu0 %v3149_v0 }
 0x1a8   :  { %v3666_v36 = vpack.c.bf16 %v1344_v51, %v1341_v40  ;;  %v3668_v56 = vsub.f32 %v1289_v43, %v1341_v40  ;;  %v1462_v43 = vand.u32 4294901760, %v3655_v33 }
 0x1aa   :  { %2827 = vmatpush3.bf16.msra.mxu0 %v2826_v35  ;;  %v1399_v35 = vand.u32 4294901760, %v3502_v10 }
 0x1ab   :  { %2828 = vmatprep.subr.bf16.mxu0 %v3149_v0 }
 0x1ac   :  { %v1400_v41 = vsub.f32 %v3502_v10, %v1399_v35 }
 0x1ae   :  { %2830 = vmatpush3.bf16.msra.mxu0 %v2829_v57  ;;  %v3670_v57 = vsub.f32 %v1290_v58, %v1344_v51  ;;  %v1469_v58 = vand.u32 4294901760, %v3657_v47  ;;  %v1463_v51 = vsub.f32 %v3655_v33, %v1462_v43 }
 0x1af   :  { %2831 = vmatprep.subr.bf16.mxu0 %v3149_v0 }
 0x1b0   :  { %v1470_v42 = vsub.f32 %v3657_v47, %v1469_v58 }
 0x1b2   :  { %2833 = vmatpush3.bf16.msra.mxu0 %v2832_v44  ;;  %v1406_v44 = vand.u32 4294901760, %v3504_v21 }
 0x1b3   :  { %2834 = vmatprep.subr.bf16.mxu0 %v3149_v0 }
 0x1b4   :  { %v1407_v8 = vsub.f32 %v3504_v21, %v1406_v44 }
 0x1b6   :  { %2836 = vmatpush3.bf16.msra.mxu0 %v2835_v50  ;;  %v1401_v50 = vand.u32 4294901760, %v1400_v41  ;;  %v1408_v27 = vand.u32 4294901760, %v1407_v8  ;;  %v1464_v41 = vand.u32 4294901760, %v1463_v51  ;;  %v3906_v8 = vand.u32 4294901760, %v3662_v34 }
 0x1b7   :  { %2837 = vmatprep.subr.bf16.mxu0 %v3149_v0 }
 0x1ba   :  { %2839 = vmatpush3.bf16.msra.mxu0 %v2838_v53  ;;  %v3688_v53 = vpack.c.bf16 %v1401_v50, %v1394_v4  ;;  %v1471_v4 = vand.u32 4294901760, %v1470_v42 }
 0x1bb   :  { %2840 = vmatprep.subr.bf16.mxu0 %v3149_v0 }
 0x1bc   :  { %v2907_v9 = vpack.c.bf16 %v1471_v4, %v1464_v41  ;;  %v2931_v4 = vpack.c.bf16 %v3657_v47, %v3655_v33 }
 0x1be   :  { %2842 = vmatpush3.bf16.msra.mxu0 %v2841_v60 }
 0x1bf   :  { %2843 = vmatprep.subr.bf16.mxu0 %v3149_v0 }
 0x1c1   :  { %2440 = vmatmul.mubr.f32.vlgmr.msra.gmra.mrb[6].mxu0 %v3469_v5 }
 0x1c2   :  { %2845 = vmatpush3.bf16.msra.mxu0 %v3304_v48  ;;  %2474 = vmatprep.mubr.msk.f32.mxu0 %vm3150_vm0, %v3151_v1  ;;  %v1279_v48 = vld [vmem:[#allocation7 + $0x20] sm:$0xff] }
 0x1c3   :  { %2846 = vmatprep.subr.bf16.mxu0 %v3149_v0 }
 0x1c6   :  { %2848 = vmatpush3.bf16.msra.mxu0 %v3312_v55  ;;  %v1280_v55 = vld [vmem:[#allocation7 + $0x28] sm:$0xff] }
 0x1c7   :  { %2849 = vmatprep.subr.bf16.mxu0 %v3149_v0 }
 0x1ca   :  { %2851 = vmatpush3.bf16.msra.mxu0 %v3320_v62  ;;  %v1311_v62 = vand.u32 4294901760, %v1279_v48 }
 0x1cb   :  { %2852 = vmatprep.subr.bf16.mxu0 %v3149_v0 }
 0x1cc   :  { %v3642_v49 = vsub.f32 %v1279_v48, %v1311_v62 }
 0x1ce   :  { %2854 = vmatpush3.bf16.msra.mxu0 %v3328_v7  ;;  %v1314_v7 = vand.u32 4294901760, %v1280_v55  ;;  %v1420_v60 = vand.u32 4294901760, %v3642_v49 }
 0x1cf   :  { %2855 = vmatprep.subr.bf16.mxu0 %v3149_v0 }
 0x1d0   :  { %v3624_v29 = vpack.c.bf16 %v1314_v7, %v1311_v62  ;;  %v3644_v59 = vsub.f32 %v1280_v55, %v1314_v7  ;;  %v3692_v55 = vpack.c.bf16 %v1415_v28, %v1408_v27  ;;  %v1421_v62 = vsub.f32 %v3642_v49, %v1420_v60 }
 0x1d1   :  { %v1484_v28 = vsub.f32 %v3662_v34, %v3906_v8 }
 0x1d2   :  { %2857 = vmatpush3.bf16.msra.mxu0 %v3336_v14  ;;  %v1281_v14 = vld [vmem:[#allocation7 + $0x30] sm:$0xff]  ;;  %2875 = vmatpush3.bf16.msra.mxu1 %v3624_v29  ;;  %v1427_v48 = vand.u32 4294901760, %v3644_v59  ;;  %v2922_v51 = vpack.c.bf16 %v3644_v59, %v3642_v49 }
 0x1d3   :  { %2858 = vmatprep.subr.bf16.mxu0 %v3149_v0  ;;  %2876 = vmatprep.subr.bf16.mxu1 %v3149_v0 }
 0x1d4   :  { %v1428_v7 = vsub.f32 %v3644_v59, %v1427_v48  ;;  %v3922_v59 = vand.u32 4294901760, %v3662_v34 }
 0x1d6   :  { %2860 = vmatpush3.bf16.msra.mxu0 %v3340_v19  ;;  %v1317_v19 = vand.u32 4294901760, %v1281_v14 }
 0x1d7   :  { %2861 = vmatprep.subr.bf16.mxu0 %v3149_v0 }
 0x1d8   :  { %v3646_v12 = vsub.f32 %v1281_v14, %v1317_v19  ;;  %v1422_v14 = vand.u32 4294901760, %v1421_v62 }
 0x1da   :  { %2863 = vmatpush3.bf16.msra.mxu0 %v3344_v24  ;;  %v3628_v24 = vpack.c.bf16 %v1320_v31, %v1317_v19  ;;  %v1434_v30 = vand.u32 4294901760, %v3646_v12  ;;  %v1441_v19 = vand.u32 4294901760, %v3648_v16  ;;  %v1429_v31 = vand.u32 4294901760, %v1428_v7 }
 0x1db   :  { %2864 = vmatprep.subr.bf16.mxu0 %v3149_v0  ;;  %v1485_v7 = vand.u32 4294901760, %v1484_v28  ;;  %v2925_v42 = vpack.c.bf16 %v3648_v16, %v3646_v12  ;;  %v2937_v28 = vpack.c.bf16 %v3670_v57, %v3668_v56 }
 0x1dc   :  { %2878 = vmatpush3.bf16.msra.mxu1 %v3628_v24  ;;  %v1442_v37 = vsub.f32 %v3648_v16, %v1441_v19  ;;  %v3923_v16 = vand.u32 4294901760, %v3668_v56 }
 0x1dd   :  { %2879 = vmatprep.subr.bf16.mxu1 %v3149_v0 }
 0x1de   :  { %2866 = vmatpush3.bf16.msra.mxu0 %v3364_v38  ;;  %v1323_v38 = vand.u32 4294901760, %v1283_v32  ;;  %v1443_v15 = vand.u32 4294901760, %v1442_v37 }
 0x1e0   :  { %v3632_v61 = vpack.c.bf16 %v1326_v39, %v1323_v38  ;;  %v3651_v18 = vsub.f32 %v1283_v32, %v1323_v38  ;;  %v1435_v32 = vsub.f32 %v3646_v12, %v1434_v30  ;;  %v2898_v38 = vpack.c.bf16 %v1429_v31, %v1422_v14 }
 0x1e1   :  { %2475 = vmatmul.mubr.f32.vlgmr.msra.gmra.mrb[6].mxu0 %v3469_v5  ;;  %v1335_v5 = vand.u32 4294901760, %v1287_v46  ;;  %v3905_v14 = vand.u32 4294901760, %v3668_v56  ;;  %v3904_v31 = vand.u32 4294901760, %v3670_v57 }
 0x1e2   :  { %2881 = vmatpush3.bf16.msra.mxu1 %v3632_v61  ;;  %v1436_v39 = vand.u32 4294901760, %v1435_v32  ;;  %v1448_v11 = vand.u32 4294901760, %v3651_v18  ;;  %v2928_v41 = vpack.c.bf16 %v3653_v26, %v3651_v18 }
 0x1e3   :  { %2882 = vmatprep.subr.bf16.mxu1 %v3149_v0  ;;  %v3640_v2 = vpack.c.bf16 %v1338_v54, %v1335_v5  ;;  %v3660_v23 = vsub.f32 %v1287_v46, %v1335_v5  ;;  %v1457_v54 = vand.u32 4294901760, %v1456_v17  ;;  %v1491_v37 = vsub.f32 %v3668_v56, %v3905_v14 }
 0x1e4   :  { %v2901_v45 = vpack.c.bf16 %v1443_v15, %v1436_v39  ;;  %v1449_v46 = vsub.f32 %v3651_v18, %v1448_v11  ;;  %v1498_v39 = vsub.f32 %v3670_v57, %v3904_v31  ;;  %v3924_v18 = vand.u32 4294901760, %v3670_v57 }
 0x1e5   :  { %v3907_v50 = vand.u32 4294901760, %v3660_v23  ;;  %v1492_v15 = vand.u32 4294901760, %v1491_v37  ;;  %v3921_v49 = vand.u32 4294901760, %v3660_v23 }
 0x1e6   :  { %2884 = vmatpush3.bf16.msra.mxu1 %v3636_v25  ;;  %v1450_v5 = vand.u32 4294901760, %v1449_v46  ;;  %v1499_v46 = vand.u32 4294901760, %v1498_v39  ;;  %v2985_v26 = vpack.c.bf16 %v3924_v18, %v3923_v16 }
 0x1e7   :  { %2885 = vmatprep.subr.bf16.mxu1 %v3149_v0  ;;  %v1477_v27 = vsub.f32 %v3660_v23, %v3907_v50  ;;  %v2982_v12 = vpack.c.bf16 %v3922_v59, %v3921_v49 }
 0x1e8   :  { %v2904_v40 = vpack.c.bf16 %v1457_v54, %v1450_v5  ;;  %v2913_v17 = vpack.c.bf16 %v1499_v46, %v1492_v15  ;;  %v2916_v5 = vpack.c.bf16 %v3502_v10, %v3500_v6  ;;  %v2919_v54 = vpack.c.bf16 %v3506_v20, %v3504_v21 }
 0x1e9   :  { %v1478_v62 = vand.u32 4294901760, %v1477_v27  ;;  %v2934_v27 = vpack.c.bf16 %v3662_v34, %v3660_v23  ;;  %v2970_v6 = vpack.c.bf16 %v1427_v48, %v1420_v60  ;;  %v2973_v10 = vpack.c.bf16 %v1441_v19, %v1434_v30 }
 0x1ea   :  { %2887 = vmatpush3.bf16.msra.mxu1 %v3640_v2  ;;  %v2976_v21 = vpack.c.bf16 %v1455_v13, %v1448_v11  ;;  %v2979_v20 = vpack.c.bf16 %v1469_v58, %v1462_v43 }
 0x1eb   :  { %2888 = vmatprep.subr.bf16.mxu1 %v3149_v0  ;;  %v2910_v32 = vpack.c.bf16 %v1485_v7, %v1478_v62  ;;  %v1965_v62 = vld [vmem:[%s3887_s8] ss:$0 sm:$0xff] }
 0x1ee   :  { %2890 = vmatpush3.bf16.msra.mxu1 %v3666_v36 }
 0x1ef   :  { %2891 = vmatprep.subr.bf16.mxu1 %v3149_v0 }
 0x2b4   :  { %v1270_v7 = vpop.f32.mrb[6].mxu0 }
 0x2b5   :  { %v3011_v37 = vadd.f32 %v1965_v62, %v1270_v7  ;;  %v2476_v39 = vpop.f32.mrb[7].mxu0 }
 0x2b7   :  { %3044 = vtanh.f32 %v3011_v37 }
 0x2c1   :  { %v3045_v15 = vpop.eup %3044 }
 0x2c2   :  { %v3759_v46 = vand.u32 4294901760, %v3045_v15 }
 0x2c4   :  { %v1380_v31 = vsub.f32 %v3045_v15, %v3759_v46 }
 0x2c6   :  { %v1381_v14 = vand.u32 4294901760, %v1380_v31 }
 0x2c8   :  { %v1382_v8 = vsub.f32 %v1380_v31, %v1381_v14 }
 0x2ca   :  { %v1383_v50 = vand.u32 4294901760, %v1382_v8 }
 0x2cc   :  { %2510 = vmatmul.mubr.f32.vlgmr.msra.gmra.mrb[6].mxu1 %v1383_v50 }
 0x2cd   :  { %2893 = vmatpush3.bf16.msra.mxu1 %v3688_v53  ;;  %2544 = vmatprep.mubr.msk.f32.mxu1 %vm3150_vm0, %v3151_v1  ;;  %v2964_v53 = vpack.c.bf16 %v1399_v35, %v1392_v52 }
 0x2ce   :  { %2894 = vmatprep.subr.bf16.mxu1 %v3149_v0 }
 0x2d1   :  { %2896 = vmatpush3.bf16.msra.mxu1 %v3692_v55  ;;  %v2967_v55 = vpack.c.bf16 %v1413_v3, %v1406_v44 }
 0x2d2   :  { %2897 = vmatprep.subr.bf16.mxu1 %v3149_v0 }
 0x2d5   :  { %2899 = vmatpush3.bf16.msra.mxu1 %v2898_v38 }
 0x2d6   :  { %2900 = vmatprep.subr.bf16.mxu1 %v3149_v0 }
 0x2d9   :  { %2902 = vmatpush3.bf16.msra.mxu1 %v2901_v45 }
 0x2da   :  { %2903 = vmatprep.subr.bf16.mxu1 %v3149_v0 }
 0x2dd   :  { %2905 = vmatpush3.bf16.msra.mxu1 %v2904_v40 }
 0x2de   :  { %2906 = vmatprep.subr.bf16.mxu1 %v3149_v0 }
 0x2e1   :  { %2908 = vmatpush3.bf16.msra.mxu1 %v2907_v9 }
 0x2e2   :  { %2909 = vmatprep.subr.bf16.mxu1 %v3149_v0 }
 0x2e5   :  { %2911 = vmatpush3.bf16.msra.mxu1 %v2910_v32 }
 0x2e6   :  { %2912 = vmatprep.subr.bf16.mxu1 %v3149_v0 }
 0x2e9   :  { %2914 = vmatpush3.bf16.msra.mxu1 %v2913_v17 }
 0x2ea   :  { %2915 = vmatprep.subr.bf16.mxu1 %v3149_v0 }
 0x2ec   :  { %2545 = vmatmul.mubr.f32.vlgmr.msra.gmra.mrb[6].mxu1 %v3759_v46 }
 0x2ed   :  { %2917 = vmatpush3.bf16.msra.mxu1 %v2916_v5  ;;  %2579 = vmatprep.mubr.msk.f32.mxu1 %vm3150_vm0, %v3151_v1 }
 0x2ee   :  { %2918 = vmatprep.subr.bf16.mxu1 %v3149_v0 }
 0x2f1   :  { %2920 = vmatpush3.bf16.msra.mxu1 %v2919_v54 }
 0x2f2   :  { %2921 = vmatprep.subr.bf16.mxu1 %v3149_v0 }
 0x2f5   :  { %2923 = vmatpush3.bf16.msra.mxu1 %v2922_v51 }
 0x2f6   :  { %2924 = vmatprep.subr.bf16.mxu1 %v3149_v0 }
 0x2f9   :  { %2926 = vmatpush3.bf16.msra.mxu1 %v2925_v42 }
 0x2fa   :  { %2927 = vmatprep.subr.bf16.mxu1 %v3149_v0 }
 0x2fd   :  { %2929 = vmatpush3.bf16.msra.mxu1 %v2928_v41 }
 0x2fe   :  { %2930 = vmatprep.subr.bf16.mxu1 %v3149_v0 }
 0x301   :  { %2932 = vmatpush3.bf16.msra.mxu1 %v2931_v4 }
 0x302   :  { %2933 = vmatprep.subr.bf16.mxu1 %v3149_v0 }
 0x305   :  { %2935 = vmatpush3.bf16.msra.mxu1 %v2934_v27 }
 0x306   :  { %2936 = vmatprep.subr.bf16.mxu1 %v3149_v0 }
 0x309   :  { %2938 = vmatpush3.bf16.msra.mxu1 %v2937_v28 }
 0x30a   :  { %2939 = vmatprep.subr.bf16.mxu1 %v3149_v0 }
 0x30c   :  { %2580 = vmatmul.mubr.f32.vlgmr.msra.gmra.mrb[6].mxu1 %v1380_v31 }
 0x30d   :  { %2941 = vmatpush3.bf16.msra.mxu1 %v3498_v63  ;;  %2614 = vmatprep.mubr.msk.f32.mxu1 %vm3150_vm0, %v3151_v1 }
 0x30e   :  { %2942 = vmatprep.subr.bf16.mxu1 %v3149_v0 }
 0x311   :  { %2944 = vmatpush3.bf16.msra.mxu1 %v3512_v22 }
 0x312   :  { %2945 = vmatprep.subr.bf16.mxu1 %v3149_v0 }
 0x315   :  { %2947 = vmatpush3.bf16.msra.mxu1 %v3624_v29 }
 0x316   :  { %2948 = vmatprep.subr.bf16.mxu1 %v3149_v0 }
 0x319   :  { %2950 = vmatpush3.bf16.msra.mxu1 %v3628_v24 }
 0x31a   :  { %2951 = vmatprep.subr.bf16.mxu1 %v3149_v0 }
 0x31d   :  { %2953 = vmatpush3.bf16.msra.mxu1 %v3632_v61 }
 0x31e   :  { %2954 = vmatprep.subr.bf16.mxu1 %v3149_v0 }
 0x321   :  { %2956 = vmatpush3.bf16.msra.mxu1 %v3636_v25 }
 0x322   :  { %2957 = vmatprep.subr.bf16.mxu1 %v3149_v0 }
 0x325   :  { %2959 = vmatpush3.bf16.msra.mxu1 %v3640_v2 }
 0x326   :  { %2960 = vmatprep.subr.bf16.mxu1 %v3149_v0 }
 0x329   :  { %2962 = vmatpush3.bf16.msra.mxu1 %v3666_v36 }
 0x32a   :  { %2963 = vmatprep.subr.bf16.mxu1 %v3149_v0 }
 0x32c   :  { %2615 = vmatmul.mubr.f32.vlgmr.msra.gmra.mrb[6].mxu1 %v1381_v14 }
 0x32d   :  { %2965 = vmatpush3.bf16.msra.mxu1 %v2964_v53  ;;  %2649 = vmatprep.mubr.msk.f32.mxu1 %vm3150_vm0, %v3151_v1 }
 0x32e   :  { %2966 = vmatprep.subr.bf16.mxu1 %v3149_v0 }
 0x331   :  { %2968 = vmatpush3.bf16.msra.mxu1 %v2967_v55 }
 0x332   :  { %2969 = vmatprep.subr.bf16.mxu1 %v3149_v0 }
 0x335   :  { %2971 = vmatpush3.bf16.msra.mxu1 %v2970_v6 }
 0x336   :  { %2972 = vmatprep.subr.bf16.mxu1 %v3149_v0 }
 0x339   :  { %2974 = vmatpush3.bf16.msra.mxu1 %v2973_v10 }
 0x33a   :  { %2975 = vmatprep.subr.bf16.mxu1 %v3149_v0 }
 0x33d   :  { %2977 = vmatpush3.bf16.msra.mxu1 %v2976_v21 }
 0x33e   :  { %2978 = vmatprep.subr.bf16.mxu1 %v3149_v0 }
 0x341   :  { %2980 = vmatpush3.bf16.msra.mxu1 %v2979_v20 }
 0x342   :  { %2981 = vmatprep.subr.bf16.mxu1 %v3149_v0 }
 0x345   :  { %2983 = vmatpush3.bf16.msra.mxu1 %v2982_v12 }
 0x346   :  { %2984 = vmatprep.subr.bf16.mxu1 %v3149_v0 }
 0x349   :  { %2986 = vmatpush3.bf16.msra.mxu1 %v2985_v26 }
 0x34a   :  { %2987 = vmatprep.subr.bf16.mxu1 %v3149_v0 }
 0x34c   :  { %2650 = vmatmul.mubr.f32.vlgmr.msra.gmra.mrb[6].mxu1 %v3759_v46 }
 0x34d   :  { %2989 = vmatpush3.bf16.msra.mxu1 %v3498_v63  ;;  %2684 = vmatprep.mubr.msk.f32.mxu1 %vm3150_vm0, %v3151_v1  ;;  %v1966_v1 = vld [vmem:[%s3889_s10] ss:$0 sm:$0xff] }
 0x34e   :  { %2990 = vmatprep.subr.bf16.mxu1 %v3149_v0 }
 0x351   :  { %2992 = vmatpush3.bf16.msra.mxu1 %v3512_v22 }
 0x352   :  { %2993 = vmatprep.subr.bf16.mxu1 %v3149_v0 }
 0x355   :  { %2995 = vmatpush3.bf16.msra.mxu1 %v3624_v29 }
 0x356   :  { %2996 = vmatprep.subr.bf16.mxu1 %v3149_v0 }
 0x359   :  { %2998 = vmatpush3.bf16.msra.mxu1 %v3628_v24 }
 0x35a   :  { %2999 = vmatprep.subr.bf16.mxu1 %v3149_v0 }
 0x35d   :  { %3001 = vmatpush3.bf16.msra.mxu1 %v3632_v61 }
 0x35e   :  { %3002 = vmatprep.subr.bf16.mxu1 %v3149_v0 }
 0x361   :  { %3004 = vmatpush3.bf16.msra.mxu1 %v3636_v25 }
 0x362   :  { %3005 = vmatprep.subr.bf16.mxu1 %v3149_v0 }
 0x365   :  { %3007 = vmatpush3.bf16.msra.mxu1 %v3640_v2 }
 0x366   :  { %3008 = vmatprep.subr.bf16.mxu1 %v3149_v0 }
 0x369   :  { %3010 = vmatpush3.bf16.msra.mxu1 %v3666_v36 }
 0x36c   :  { %2685 = vmatmul.mubr.f32.vlgmr.msra.gmra.mrb[6].mxu1 %v3759_v46 }
 0x43f   :  { %v1935_v63 = vpop.f32.mrb[6].mxu1 }
 0x440   :  { %v3012_v22 = vadd.f32 %v1966_v1, %v1935_v63  ;;  %v2686_v29 = vpop.f32.mrb[7].mxu1 }
 0x442   :  { %v1939_v24 = vsub.f32 0.0, %v3012_v22 }
 0x444   :  { %v1940_v61 = vmul.f32 1.442695, %v1939_v24 }
 0x446   :  { %3046 = vpow2.f32 %v1940_v61 }
 0x450   :  { %v3047_v25 = vpop.eup %3046 }
 0x451   :  { %v1942_v33 = vadd.f32 1.0, %v3047_v25 }
 0x453   :  { %3048 = vrcp.f32 %v1942_v33 }
 0x45d   :  { %v3049_v0 = vpop.eup %3048 }
 0x45e   :  { %1945 = vst [vmem:[#allocation8] sm:$0xff] %v3049_v0 }
 0x45f   :  { %3127 = shalt.err (!%p3124_p0)
}
 0x460   :  { %s3128_s17 = scalar_lea.hbm %s3890_s11, 128 }
 0x461   :  { %p3129_p1 = scmp.ne.s32.totalorder %s3890_s11, %s3128_s17  ;;  %p3132_p2 = scmp.lt.u32.totalorder %s3128_s17, %s3890_s11 }
 0x463   :  { %p3134_p3 = pnand %p3132_p2, %p3129_p1 }
 0x465   :  { %3137 = shalt.err (!%p3134_p3)
}
 0x466   :  { %1955 = dma.vmem_to_hbm [thread:$0]  %s1953_s12, 128, %s3890_s11, [#allocation4]  }
 0x467   :  { %3142 = dma.done.wait [#allocation4], 128  }
 0x468   :  { %3143 = vsyncadd [#allocation4], 4294967168 }
 0x469   :  { %1959 = vsyncpa [#allocation3], 1 }
 0x46a   :  { %1960 = vsyncpa [#allocation6], 1 }
 0x46b   :  { %1961 = vsyncpa [#allocation4], 1 }

</bundles_post_ra>
